<compile_context>
chip_gen: v5e
topology: v5e:2x2
jax: 0.10.0
libtpu: 0.0.40
codegen_flags: <defaults>
</compile_context>

<pallas_src>
import functools

import jax
import jax.numpy as jnp
from jax.experimental import pallas as pl
from jax.experimental.pallas import tpu as pltpu


def _round_up(x: int, m: int) -> int:
    return ((x + m - 1) // m) * m


def _vmem_capacity_bytes() -> int:
    """Physical VMEM of the current generation (conservative default)."""
    try:
        return int(pltpu.get_tpu_info().vmem_capacity_bytes)
    except Exception:
        return 64 * 1024 * 1024  # v7x per-core VMEM (smallest of the fleet)


def _pick_tile_b(B: int, vmem_cap: int) -> int:
    """Batch tile: multiple of 16 (bf16 sublanes); >=2 tiles for megacore."""
    if B <= 32:
        return _round_up(max(B, 16), 16)
    if B <= 1024:
        # At least two tiles so both v7x TensorCores get a share of the batch.
        return _round_up(pl.cdiv(B, 2), 16)
    # Large batch: biggest tile the generation's VMEM comfortably allows
    # (v5e/v6e have 128 MiB -> 1024-row tiles amortize per-step overhead).
    return 1024 if vmem_cap >= 96 * 1024 * 1024 else 512


def _vmem_bytes_needed(tile_b, f_cols, t_cols, h_pad, l_pad, weight_bufs):
    """Approximate tiled VMEM footprint (lane/sublane rounded)."""
    lane = lambda n: _round_up(n, 128)
    act = (2 * tile_b * lane(f_cols) * 4      # x tiles (f32, double-buffered)
           + 2 * tile_b * lane(t_cols) * 4    # tp tiles
           + 2 * tile_b * l_pad * 4           # output tiles (f32)
           + tile_b * h_pad * 4)              # hidden intermediate (f32)
    wgt = weight_bufs * (
        _round_up(f_cols, 16) * h_pad * 2     # W1_data (bf16)
        + _round_up(t_cols, 16) * h_pad * 2   # W1_time (bf16)
        + h_pad * l_pad * 2                   # W2 (bf16)
        + 8 * h_pad * 4 + 8 * l_pad * 4)      # biases (f32, sublane padded)
    return act + wgt


def _mlp_kernel(x_ref, tp_ref, w1d_ref, w1t_ref, b1_ref, w2_ref, b2_ref, o_ref):
    # Cast activations to bf16 in-kernel (VPU cast hides under the MXU); the
    # wrapper never materializes a padded bf16 copy of x in HBM.
    x = x_ref[...].astype(jnp.bfloat16)
    tp = tp_ref[...].astype(jnp.bfloat16)
    # hidden = relu(x_data @ W1_data + tp @ W1_time + b1), f32 accumulation.
    h = jnp.dot(x, w1d_ref[...], preferred_element_type=jnp.float32)
    h = h + jnp.dot(tp, w1t_ref[...], preferred_element_type=jnp.float32)
    h = jnp.maximum(h + b1_ref[...], 0.0)
    # out = hidden @ W2 + b2 (hidden re-cast to bf16 for the MXU).
    out = jnp.dot(h.astype(jnp.bfloat16), w2_ref[...],
                  preferred_element_type=jnp.float32)
    o_ref[...] = (out + b2_ref[...]).astype(o_ref.dtype)


@functools.partial(jax.jit, static_argnames=("single_buffer_weights",))
def _mlp_pallas(x_flat, tp_flat, w1d_p, w1t_p, b1_p, w2_p, b2_p,
                *, single_buffer_weights: bool):
    """Fused 2-layer MLP on pre-padded weights. Returns padded (B_pad, L_pad)."""
    B, F = x_flat.shape
    T = tp_flat.shape[1]
    H_pad = w1d_p.shape[1]
    L_pad = w2_p.shape[1]

    vmem_cap = _vmem_capacity_bytes()
    weight_bufs = 1 if single_buffer_weights else 2

    TILE_B = _pick_tile_b(B, vmem_cap)
    while (TILE_B > 16 and
           _vmem_bytes_needed(TILE_B, F, T, H_pad, L_pad, weight_bufs)
           > int(0.8 * vmem_cap)):
        TILE_B = max(16, TILE_B // 2)

    B_pad = _round_up(B, TILE_B)
    n_tiles = B_pad // TILE_B
    if B_pad != B:
        x_flat = jnp.pad(x_flat, ((0, B_pad - B), (0, 0)))
        tp_flat = jnp.pad(tp_flat, ((0, B_pad - B), (0, 0)))

    vmem_needed = _vmem_bytes_needed(TILE_B, F, T, H_pad, L_pad, weight_bufs)
    vmem_limit = int(min(0.9 * vmem_cap,
                         max(1.25 * vmem_needed, 32 * 1024 * 1024)))

    cost = pl.CostEstimate(
        flops=2 * B_pad * (F * H_pad + T * H_pad + H_pad * L_pad),
        transcendentals=0,
        bytes_accessed=(B_pad * F * 4 + B_pad * T * 4
                        + F * H_pad * 2 + T * H_pad * 2 + H_pad * L_pad * 2
                        + H_pad * 4 + L_pad * 4 + B_pad * L_pad * 4),
    )

    if single_buffer_weights:
        def const_spec(shape):
            # Grid-invariant operand: never re-DMA'd, so one VMEM buffer.
            return pl.BlockSpec(shape, lambda i: (0, 0),
                                pipeline_mode=pl.Buffered(1))
    else:
        def const_spec(shape):
            return pl.BlockSpec(shape, lambda i: (0, 0))

    return pl.pallas_call(
        _mlp_kernel,
        out_shape=jax.ShapeDtypeStruct((B_pad, L_pad), jnp.float32),
        grid=(n_tiles,),
        in_specs=[
            pl.BlockSpec((TILE_B, F), lambda i: (i, 0)),   # streamed x rows (f32)
            pl.BlockSpec((TILE_B, T), lambda i: (i, 0)),   # streamed tp rows (f32)
            const_spec((F, H_pad)),                        # W1_data (resident)
            const_spec((T, H_pad)),                        # W1_time (resident)
            const_spec((1, H_pad)),                        # b1
            const_spec((H_pad, L_pad)),                    # W2 (resident)
            const_spec((1, L_pad)),                        # b2
        ],
        out_specs=pl.BlockSpec((TILE_B, L_pad), lambda i: (i, 0)),
        compiler_params=pltpu.CompilerParams(
            dimension_semantics=("parallel",),  # batch tiles shard across TCs
            vmem_limit_bytes=vmem_limit,
        ),
        cost_estimate=cost,
    )(x_flat, tp_flat, w1d_p, w1t_p, b1_p, w2_p, b2_p)


_SINGLE_BUFFER_WEIGHTS = None  # resolved on first call


def dnn_encoder_mlp(x_flat, tp_flat, w1d_p, w1t_p, b1_p, w2_p, b2_p):
    """Dispatch wrapper: prefer single-buffered resident weights, fall back."""
    global _SINGLE_BUFFER_WEIGHTS
    if _SINGLE_BUFFER_WEIGHTS is None:
        try:
            out = _mlp_pallas(x_flat, tp_flat, w1d_p, w1t_p, b1_p, w2_p, b2_p,
                              single_buffer_weights=True)
            jax.block_until_ready(out)
            _SINGLE_BUFFER_WEIGHTS = True
            return out
        except Exception:
            _SINGLE_BUFFER_WEIGHTS = False
    return _mlp_pallas(x_flat, tp_flat, w1d_p, w1t_p, b1_p, w2_p, b2_p,
                       single_buffer_weights=_SINGLE_BUFFER_WEIGHTS)


class DNNEncoder:
    """JAX/Pallas re-implementation of torchlaplace.encoders.DNNEncoder."""

    def __init__(self, dimension_in, latent_dim, hidden_units,
                 encode_obs_time=False, *, timesteps, key):
        self.encode_obs_time = encode_obs_time
        self.latent_dim = latent_dim
        self.hidden_units = hidden_units
        self.timesteps = timesteps
        self.data_dim = dimension_in

        dim_in = dimension_in + (1 if encode_obs_time else 0)
        in_features = dim_in * timesteps

        k1, k2, k3, k4 = jax.random.split(key, 4)
        # Deterministic init mimicking nn.Linear (uniform in +-1/sqrt(fan_in)).
        lim1 = 1.0 / jnp.sqrt(in_features)
        lim2 = 1.0 / jnp.sqrt(hidden_units)
        self.w1 = jax.random.uniform(k1, (in_features, hidden_units),
                                     jnp.float32, -lim1, lim1)
        self.b1 = jax.random.uniform(k2, (1, hidden_units),
                                     jnp.float32, -lim1, lim1)
        self.w2 = jax.random.uniform(k3, (hidden_units, latent_dim),
                                     jnp.float32, -lim2, lim2)
        self.b2 = jax.random.uniform(k4, (1, latent_dim),
                                     jnp.float32, -lim2, lim2)

        # ---- one-time padded / bf16 kernel operands (hoisted out of fwd) ---
        H_pad = _round_up(hidden_units, 128)   # lane-dense hidden
        L_pad = _round_up(latent_dim, 128)     # lane-dense output (full vst)
        T, D = timesteps, dimension_in
        if encode_obs_time:
            # Split W1 rows into data rows / time rows in the order produced
            # by flatten(concat(data, tp)), i.e. feature f = t*(D+1)+j.
            idx = jnp.arange(T * (D + 1)).reshape(T, D + 1)
            w1_data = self.w1[idx[:, :D].reshape(-1)]     # (T*D, H)
            w1_time = self.w1[idx[:, D]]                  # (T,   H)
        else:
            w1_data = self.w1                             # (T*D, H)
            w1_time = jnp.zeros((8, hidden_units), jnp.float32)  # inert dummy

        self.w1d_p = jnp.zeros((w1_data.shape[0], H_pad), jnp.bfloat16
                               ).at[:, :hidden_units].set(w1_data.astype(jnp.bfloat16))
        self.w1t_p = jnp.zeros((w1_time.shape[0], H_pad), jnp.bfloat16
                               ).at[:, :hidden_units].set(w1_time.astype(jnp.bfloat16))
        self.b1_p = jnp.zeros((1, H_pad), jnp.float32
                              ).at[:, :hidden_units].set(self.b1)
        self.w2_p = jnp.zeros((H_pad, L_pad), jnp.bfloat16
                              ).at[:hidden_units, :latent_dim].set(self.w2.astype(jnp.bfloat16))
        self.b2_p = jnp.zeros((1, L_pad), jnp.float32
                              ).at[:, :latent_dim].set(self.b2)

    def __call__(self, observed_data, observed_tp):
        # observed_data: (B, T, D); observed_tp: (T,) or (B, T).
        B, T, D = observed_data.shape
        x_flat = observed_data.reshape(B, T * D).astype(jnp.float32)
        if self.encode_obs_time:
            if observed_tp.ndim > 1 and observed_tp.shape[0] > 1:
                tp = observed_tp.reshape(observed_tp.shape[0], -1)
            else:
                tp = jnp.tile(observed_tp.reshape(1, -1), (B, 1))
            tp = tp.astype(jnp.float32)
        else:
            tp = jnp.zeros((B, self.w1t_p.shape[0]), jnp.float32)
        out_p = dnn_encoder_mlp(x_flat, tp, self.w1d_p, self.w1t_p,
                                self.b1_p, self.w2_p, self.b2_p)
        # Output stays f32 for parity with the torch module.
        return out_p[:B, :self.latent_dim]


if __name__ == "__main__":
    key = jax.random.PRNGKey(0)
    k_data, k_params = jax.random.split(key, 2)

    B, T, D = 2, 8, 4          # batch, timesteps, input dimension
    hidden_units, latent_dim = 32, 16

    observed_data = jax.random.normal(k_data, (B, T, D), jnp.float32)
    observed_tp = jnp.linspace(0.0, 1.0, T, dtype=jnp.float32)  # shared grid

    enc = DNNEncoder(D, latent_dim, hidden_units,
                     encode_obs_time=True, timesteps=T, key=k_params)
    out = jax.block_until_ready(enc(observed_data, observed_tp))

    # Pure-JAX reference of the ORIGINAL concat+flatten formulation, with
    # operands mirrored to bf16 to match the kernel's MXU numerics.
    tp_ref = jnp.tile(observed_tp.reshape(1, -1, 1), (B, 1, 1))
    x_ref = jnp.concatenate((observed_data, tp_ref), axis=2).reshape(B, -1)
    xb = x_ref.astype(jnp.bfloat16).astype(jnp.float32)
    w1b = enc.w1.astype(jnp.bfloat16).astype(jnp.float32)
    w2b = enc.w2.astype(jnp.bfloat16).astype(jnp.float32)
    h_ref = jnp.maximum(xb @ w1b + enc.b1, 0.0)
    ref = h_ref.astype(jnp.bfloat16).astype(jnp.float32) @ w2b + enc.b2

    assert out.shape == (B, latent_dim)
    assert out.dtype == jnp.float32
    assert jnp.allclose(out, ref, atol=1e-2, rtol=1e-2)

    # Also exercise the encode_obs_time=False path.
    enc2 = DNNEncoder(D, latent_dim, hidden_units,
                      encode_obs_time=False, timesteps=T, key=k_params)
    out2 = jax.block_until_ready(enc2(observed_data, observed_tp))
    x2 = observed_data.reshape(B, -1).astype(jnp.bfloat16).astype(jnp.float32)
    w1b2 = enc2.w1.astype(jnp.bfloat16).astype(jnp.float32)
    w2b2 = enc2.w2.astype(jnp.bfloat16).astype(jnp.float32)
    h2 = jnp.maximum(x2 @ w1b2 + enc2.b1, 0.0)
    ref2 = h2.astype(jnp.bfloat16).astype(jnp.float32) @ w2b2 + enc2.b2
    assert out2.shape == (B, latent_dim)
    assert jnp.allclose(out2, ref2, atol=1e-2, rtol=1e-2)

    print("KERNEL_OK")
</pallas_src>

<mosaic_0001>
module attributes {stable_mosaic.version = 11 : i64} {
  func.func @_mlp_kernel(%arg0: i32, %arg1: memref<16x32xf32, #tpu.memory_space<vmem>>, %arg2: memref<16x8xf32, #tpu.memory_space<vmem>>, %arg3: memref<32x128xbf16, #tpu.memory_space<vmem>>, %arg4: memref<8x128xbf16, #tpu.memory_space<vmem>>, %arg5: memref<1x128xf32, #tpu.memory_space<vmem>>, %arg6: memref<128x128xbf16, #tpu.memory_space<vmem>>, %arg7: memref<1x128xf32, #tpu.memory_space<vmem>>, %arg8: memref<16x128xf32, #tpu.memory_space<vmem>>) attributes {dimension_semantics = [#tpu.dimension_semantics<parallel>], iteration_bounds = array<i64: 1>, scalar_prefetch = 0 : i64, scratch_operands = 0 : i64, tpu.core_type = #tpu.core_type<tc>, window_params = [{transform_indices = @transform_0, window_bounds = array<i64: 16, 32>}, {transform_indices = @transform_1, window_bounds = array<i64: 16, 8>}, {pipeline_mode = #tpu.pipeline_mode<synchronous>, transform_indices = @transform_2, window_bounds = array<i64: 32, 128>}, {pipeline_mode = #tpu.pipeline_mode<synchronous>, transform_indices = @transform_3, window_bounds = array<i64: 8, 128>}, {pipeline_mode = #tpu.pipeline_mode<synchronous>, transform_indices = @transform_4, window_bounds = array<i64: 1, 128>}, {pipeline_mode = #tpu.pipeline_mode<synchronous>, transform_indices = @transform_5, window_bounds = array<i64: 128, 128>}, {pipeline_mode = #tpu.pipeline_mode<synchronous>, transform_indices = @transform_6, window_bounds = array<i64: 1, 128>}, {transform_indices = @transform_7, window_bounds = array<i64: 16, 128>}]} {
    %c0 = arith.constant 0 : index
    %c0_0 = arith.constant 0 : index
    %0 = vector.load %arg1[%c0, %c0_0] : memref<16x32xf32, #tpu.memory_space<vmem>>, vector<16x32xf32>
    %1 = arith.truncf %0 : vector<16x32xf32> to vector<16x32xbf16>
    %c0_1 = arith.constant 0 : index
    %c0_2 = arith.constant 0 : index
    %2 = vector.load %arg2[%c0_1, %c0_2] : memref<16x8xf32, #tpu.memory_space<vmem>>, vector<16x8xf32>
    %3 = arith.truncf %2 : vector<16x8xf32> to vector<16x8xbf16>
    %c0_3 = arith.constant 0 : index
    %c0_4 = arith.constant 0 : index
    %4 = vector.load %arg3[%c0_3, %c0_4] : memref<32x128xbf16, #tpu.memory_space<vmem>>, vector<32x128xbf16>
    %cst = arith.constant dense<0.000000e+00> : vector<16x128xf32>
    %5 = tpu.matmul %1, %4, %cst {dimension_numbers = #tpu.dot_dimension_numbers<[1], [0], [0], [1], [0, 0, 1, 1], [], []>} : vector<16x32xbf16>, vector<32x128xbf16>, vector<16x128xf32> -> vector<16x128xf32>
    %c0_5 = arith.constant 0 : index
    %c0_6 = arith.constant 0 : index
    %6 = vector.load %arg4[%c0_5, %c0_6] : memref<8x128xbf16, #tpu.memory_space<vmem>>, vector<8x128xbf16>
    %cst_7 = arith.constant dense<0.000000e+00> : vector<16x128xf32>
    %7 = tpu.matmul %3, %6, %cst_7 {dimension_numbers = #tpu.dot_dimension_numbers<[1], [0], [0], [1], [0, 0, 1, 1], [], []>} : vector<16x8xbf16>, vector<8x128xbf16>, vector<16x128xf32> -> vector<16x128xf32>
    %8 = arith.addf %5, %7 : vector<16x128xf32>
    %c0_8 = arith.constant 0 : index
    %c0_9 = arith.constant 0 : index
    %9 = vector.load %arg5[%c0_8, %c0_9] : memref<1x128xf32, #tpu.memory_space<vmem>>, vector<1x128xf32>
    %10 = vector.broadcast %9 : vector<1x128xf32> to vector<16x128xf32>
    %11 = arith.addf %8, %10 : vector<16x128xf32>
    %cst_10 = arith.constant 0.000000e+00 : f32
    %12 = vector.broadcast %cst_10 : f32 to vector<16x128xf32>
    %13 = arith.maximumf %11, %12 : vector<16x128xf32>
    %14 = arith.truncf %13 : vector<16x128xf32> to vector<16x128xbf16>
    %c0_11 = arith.constant 0 : index
    %c0_12 = arith.constant 0 : index
    %15 = vector.load %arg6[%c0_11, %c0_12] : memref<128x128xbf16, #tpu.memory_space<vmem>>, vector<128x128xbf16>
    %cst_13 = arith.constant dense<0.000000e+00> : vector<16x128xf32>
    %16 = tpu.matmul %14, %15, %cst_13 {dimension_numbers = #tpu.dot_dimension_numbers<[1], [0], [0], [1], [0, 0, 1, 1], [], []>} : vector<16x128xbf16>, vector<128x128xbf16>, vector<16x128xf32> -> vector<16x128xf32>
    %c0_14 = arith.constant 0 : index
    %c0_15 = arith.constant 0 : index
    %17 = vector.load %arg7[%c0_14, %c0_15] : memref<1x128xf32, #tpu.memory_space<vmem>>, vector<1x128xf32>
    %18 = vector.broadcast %17 : vector<1x128xf32> to vector<16x128xf32>
    %19 = arith.addf %16, %18 : vector<16x128xf32>
    %c0_16 = arith.constant 0 : index
    %c0_17 = arith.constant 0 : index
    %20 = vector.load %arg8[%c0_16, %c0_17] : memref<16x128xf32, #tpu.memory_space<vmem>>, vector<16x128xf32>
    tpu.vector_store %arg8[%c0_16, %c0_17], %19 {strides = array<i32>} : memref<16x128xf32, #tpu.memory_space<vmem>>, vector<16x128xf32>,
    return
  }
  func.func @transform_0(%arg0: i32) -> (i32, i32) {
    %c0_i32 = arith.constant 0 : i32
    %c0_i32_0 = arith.constant 0 : i32
    return %arg0, %c0_i32 : i32, i32
  }
  func.func @transform_1(%arg0: i32) -> (i32, i32) {
    %c0_i32 = arith.constant 0 : i32
    %c0_i32_0 = arith.constant 0 : i32
    return %arg0, %c0_i32 : i32, i32
  }
  func.func @transform_2(%arg0: i32) -> (i32, i32) {
    %c0_i32 = arith.constant 0 : i32
    %c0_i32_0 = arith.constant 0 : i32
    %c0_i32_1 = arith.constant 0 : i32
    return %c0_i32, %c0_i32_0 : i32, i32
  }
  func.func @transform_3(%arg0: i32) -> (i32, i32) {
    %c0_i32 = arith.constant 0 : i32
    %c0_i32_0 = arith.constant 0 : i32
    %c0_i32_1 = arith.constant 0 : i32
    return %c0_i32, %c0_i32_0 : i32, i32
  }
  func.func @transform_4(%arg0: i32) -> (i32, i32) {
    %c0_i32 = arith.constant 0 : i32
    %c0_i32_0 = arith.constant 0 : i32
    %c0_i32_1 = arith.constant 0 : i32
    return %c0_i32, %c0_i32_0 : i32, i32
  }
  func.func @transform_5(%arg0: i32) -> (i32, i32) {
    %c0_i32 = arith.constant 0 : i32
    %c0_i32_0 = arith.constant 0 : i32
    %c0_i32_1 = arith.constant 0 : i32
    return %c0_i32, %c0_i32_0 : i32, i32
  }
  func.func @transform_6(%arg0: i32) -> (i32, i32) {
    %c0_i32 = arith.constant 0 : i32
    %c0_i32_0 = arith.constant 0 : i32
    %c0_i32_1 = arith.constant 0 : i32
    return %c0_i32, %c0_i32_0 : i32, i32
  }
  func.func @transform_7(%arg0: i32) -> (i32, i32) {
    %c0_i32 = arith.constant 0 : i32
    %c0_i32_0 = arith.constant 0 : i32
    return %arg0, %c0_i32 : i32, i32
  }
}

module attributes {stable_mosaic.version = 11 : i64} {
  func.func @_mlp_kernel(%arg0: i32, %arg1: memref<16x32xf32, #tpu.memory_space<vmem>>, %arg2: memref<16x8xf32, #tpu.memory_space<vmem>>, %arg3: memref<32x128xbf16, #tpu.memory_space<vmem>>, %arg4: memref<8x128xbf16, #tpu.memory_space<vmem>>, %arg5: memref<1x128xf32, #tpu.memory_space<vmem>>, %arg6: memref<128x128xbf16, #tpu.memory_space<vmem>>, %arg7: memref<1x128xf32, #tpu.memory_space<vmem>>, %arg8: memref<16x128xf32, #tpu.memory_space<vmem>>) attributes {dimension_semantics = [#tpu.dimension_semantics<parallel>], iteration_bounds = array<i64: 1>, scalar_prefetch = 0 : i64, scratch_operands = 0 : i64, tpu.core_type = #tpu.core_type<tc>, window_params = [{transform_indices = @transform_0, window_bounds = array<i64: 16, 32>}, {transform_indices = @transform_1, window_bounds = array<i64: 16, 8>}, {pipeline_mode = #tpu.pipeline_mode<synchronous>, transform_indices = @transform_2, window_bounds = array<i64: 32, 128>}, {pipeline_mode = #tpu.pipeline_mode<synchronous>, transform_indices = @transform_3, window_bounds = array<i64: 8, 128>}, {pipeline_mode = #tpu.pipeline_mode<synchronous>, transform_indices = @transform_4, window_bounds = array<i64: 1, 128>}, {pipeline_mode = #tpu.pipeline_mode<synchronous>, transform_indices = @transform_5, window_bounds = array<i64: 128, 128>}, {pipeline_mode = #tpu.pipeline_mode<synchronous>, transform_indices = @transform_6, window_bounds = array<i64: 1, 128>}, {transform_indices = @transform_7, window_bounds = array<i64: 16, 128>}]} {
    %c0 = arith.constant 0 : index
    %c0_0 = arith.constant 0 : index
    %0 = vector.load %arg1[%c0, %c0_0] : memref<16x32xf32, #tpu.memory_space<vmem>>, vector<16x32xf32>
    %1 = arith.truncf %0 : vector<16x32xf32> to vector<16x32xbf16>
    %c0_1 = arith.constant 0 : index
    %c0_2 = arith.constant 0 : index
    %2 = vector.load %arg2[%c0_1, %c0_2] : memref<16x8xf32, #tpu.memory_space<vmem>>, vector<16x8xf32>
    %3 = arith.truncf %2 : vector<16x8xf32> to vector<16x8xbf16>
    %c0_3 = arith.constant 0 : index
    %c0_4 = arith.constant 0 : index
    %4 = vector.load %arg3[%c0_3, %c0_4] : memref<32x128xbf16, #tpu.memory_space<vmem>>, vector<32x128xbf16>
    %cst = arith.constant dense<0.000000e+00> : vector<16x128xf32>
    %5 = tpu.matmul %1, %4, %cst {dimension_numbers = #tpu.dot_dimension_numbers<[1], [0], [0], [1], [0, 0, 1, 1], [], []>} : vector<16x32xbf16>, vector<32x128xbf16>, vector<16x128xf32> -> vector<16x128xf32>
    %c0_5 = arith.constant 0 : index
    %c0_6 = arith.constant 0 : index
    %6 = vector.load %arg4[%c0_5, %c0_6] : memref<8x128xbf16, #tpu.memory_space<vmem>>, vector<8x128xbf16>
    %cst_7 = arith.constant dense<0.000000e+00> : vector<16x128xf32>
    %7 = tpu.matmul %3, %6, %cst_7 {dimension_numbers = #tpu.dot_dimension_numbers<[1], [0], [0], [1], [0, 0, 1, 1], [], []>} : vector<16x8xbf16>, vector<8x128xbf16>, vector<16x128xf32> -> vector<16x128xf32>
    %8 = arith.addf %5, %7 : vector<16x128xf32>
    %c0_8 = arith.constant 0 : index
    %c0_9 = arith.constant 0 : index
    %9 = vector.load %arg5[%c0_8, %c0_9] : memref<1x128xf32, #tpu.memory_space<vmem>>, vector<1x128xf32>
    %10 = vector.broadcast %9 : vector<1x128xf32> to vector<16x128xf32>
    %11 = arith.addf %8, %10 : vector<16x128xf32>
    %cst_10 = arith.constant 0.000000e+00 : f32
    %12 = vector.broadcast %cst_10 : f32 to vector<16x128xf32>
    %13 = arith.maximumf %11, %12 : vector<16x128xf32>
    %14 = arith.truncf %13 : vector<16x128xf32> to vector<16x128xbf16>
    %c0_11 = arith.constant 0 : index
    %c0_12 = arith.constant 0 : index
    %15 = vector.load %arg6[%c0_11, %c0_12] : memref<128x128xbf16, #tpu.memory_space<vmem>>, vector<128x128xbf16>
    %cst_13 = arith.constant dense<0.000000e+00> : vector<16x128xf32>
    %16 = tpu.matmul %14, %15, %cst_13 {dimension_numbers = #tpu.dot_dimension_numbers<[1], [0], [0], [1], [0, 0, 1, 1], [], []>} : vector<16x128xbf16>, vector<128x128xbf16>, vector<16x128xf32> -> vector<16x128xf32>
    %c0_14 = arith.constant 0 : index
    %c0_15 = arith.constant 0 : index
    %17 = vector.load %arg7[%c0_14, %c0_15] : memref<1x128xf32, #tpu.memory_space<vmem>>, vector<1x128xf32>
    %18 = vector.broadcast %17 : vector<1x128xf32> to vector<16x128xf32>
    %19 = arith.addf %16, %18 : vector<16x128xf32>
    %c0_16 = arith.constant 0 : index
    %c0_17 = arith.constant 0 : index
    %20 = vector.load %arg8[%c0_16, %c0_17] : memref<16x128xf32, #tpu.memory_space<vmem>>, vector<16x128xf32>
    tpu.vector_store %arg8[%c0_16, %c0_17], %19 {strides = array<i32>} : memref<16x128xf32, #tpu.memory_space<vmem>>, vector<16x128xf32>,
    return
  }
  func.func @transform_0(%arg0: i32) -> (i32, i32) {
    %c0_i32 = arith.constant 0 : i32
    %c0_i32_0 = arith.constant 0 : i32
    return %arg0, %c0_i32 : i32, i32
  }
  func.func @transform_1(%arg0: i32) -> (i32, i32) {
    %c0_i32 = arith.constant 0 : i32
    %c0_i32_0 = arith.constant 0 : i32
    return %arg0, %c0_i32 : i32, i32
  }
  func.func @transform_2(%arg0: i32) -> (i32, i32) {
    %c0_i32 = arith.constant 0 : i32
    %c0_i32_0 = arith.constant 0 : i32
    %c0_i32_1 = arith.constant 0 : i32
    return %c0_i32, %c0_i32_0 : i32, i32
  }
  func.func @transform_3(%arg0: i32) -> (i32, i32) {
    %c0_i32 = arith.constant 0 : i32
    %c0_i32_0 = arith.constant 0 : i32
    %c0_i32_1 = arith.constant 0 : i32
    return %c0_i32, %c0_i32_0 : i32, i32
  }
  func.func @transform_4(%arg0: i32) -> (i32, i32) {
    %c0_i32 = arith.constant 0 : i32
    %c0_i32_0 = arith.constant 0 : i32
    %c0_i32_1 = arith.constant 0 : i32
    return %c0_i32, %c0_i32_0 : i32, i32
  }
  func.func @transform_5(%arg0: i32) -> (i32, i32) {
    %c0_i32 = arith.constant 0 : i32
    %c0_i32_0 = arith.constant 0 : i32
    %c0_i32_1 = arith.constant 0 : i32
    return %c0_i32, %c0_i32_0 : i32, i32
  }
  func.func @transform_6(%arg0: i32) -> (i32, i32) {
    %c0_i32 = arith.constant 0 : i32
    %c0_i32_0 = arith.constant 0 : i32
    %c0_i32_1 = arith.constant 0 : i32
    return %c0_i32, %c0_i32_0 : i32, i32
  }
  func.func @transform_7(%arg0: i32) -> (i32, i32) {
    %c0_i32 = arith.constant 0 : i32
    %c0_i32_0 = arith.constant 0 : i32
    return %arg0, %c0_i32 : i32, i32
  }
}

</mosaic_0001>

<bundles_post_ra>
// kernel: _mlp_pallas.1
= control target key start
LH: loop header
LB: loop body
LE: loop exit
PB: predicated region body
PF: predicated region fallthrough
CT: control target
= control target key end

     0   :  { %12 = vsyncpa [#allocation3], 0  ;;  %s410_s0 = inlined_call_operand.vmem [shape: f32[16,32], index: 0, kind: input, shape index: {}]   ;;  %s411_s1 = inlined_call_operand.vmem [shape: f32[16,8], index: 1, kind: input, shape index: {}]   ;;  %s412_s2 = inlined_call_operand.vmem [shape: bf16[32,128], index: 2, kind: input, shape index: {}]   ;;  %s413_s3 = inlined_call_operand.vmem [shape: bf16[8,128], index: 3, kind: input, shape index: {}]   ;;  %s414_s4 = inlined_call_operand.vmem [shape: f32[1,128], index: 4, kind: input, shape index: {}]   ;;  %s415_s5 = inlined_call_operand.hbm [shape: bf16[128,128], index: 5, kind: input, shape index: {}]   ;;  %s416_s6 = inlined_call_operand.vmem [shape: f32[1,128], index: 6, kind: input, shape index: {}]   ;;  %s417_s7 = inlined_call_operand.hbm [shape: f32[16,128], index: 7, kind: output, shape index: {}]  }
   0x1   :  { %13 = vsyncpa [#allocation4], 0  ;;  %s28_s26 = sshll.u32 %s415_s5, 4  ;;  %s331_s27 = smov [#allocation2]   ;;  %s29_s26 = int_to_ptr.hbm [resolvable:$true] %s28_s26 }
   0x2   :  { %s30_s28 = sshll.u32 %s331_s27, 4  ;;  %s332_s29 = smov 64   ;;  %s31_s28 = int_to_ptr.vmem [resolvable:$true] %s30_s28 }
   0x3   :  { %s333_s30 = smov 4  }
   0x4   :  { %36 = dma.hbm_to_vmem [thread:$0]  %s29_s26, 1024, %s31_s28, [#allocation3], %s332_s29, %s332_s29, %s333_s30  }
   0x5   :  { %327 = dma.done.wait [#allocation3], 1024  }
   0x6   :  { %328 = vsyncadd [#allocation3], 4294966272  ;;  %vm59_vm0 = vcmask 1043456   ;;  %v54_v0 = vld [vmem:[%s413_s3] sm:$0xf]  ;;  %v262_v1 = vld [vmem:[%s412_s2 + $0x8] sm:$0xff] }
   0x7   :  { %v47_v2 = vld [vmem:[%s411_s1] sm:$0xff]  ;;  %v61_v3 = vsel %vm59_vm0, %v54_v0, 0  ;;  %v48_v4 = vld [vmem:[%s411_s1 + $0x8] sm:$0xff]  ;;  %99 = vmatpush.bf16.msra.mxu1 %v262_v1  ;;  %vm55_vm1 = vcmask 64512   ;;  %v270_v9 = vld [vmem:[#allocation2 + $0x38] sm:$0xff]  ;;  %vm89_vm2 = vcmask 261120  }
   0x8   :  { %v261_v5 = vld [vmem:[%s412_s2] sm:$0xff]  ;;  %70 = vmatpush.bf16.msra.mxu0 %v61_v3  ;;  %v49_v6 = vpack.c.bf16 %v48_v4, %v47_v2  ;;  %v45_v8 = vld [vmem:[%s410_s0 + $0x8] sm:$0xff]  ;;  %184 = vmatpush.bf16.msra.mxu2 %v270_v9  ;;  %v269_v10 = vld [vmem:[#allocation2 + $0x30] sm:$0xff]  ;;  %s334_s21 = smov [#allocation5]   ;;  %s206_s24 = sshll.u32 %s417_s7, 4  ;;  %s207_s24 = int_to_ptr.hbm [resolvable:$true] %s206_s24 }
   0x9   :  { %v44_v7 = vld [vmem:[%s410_s0] sm:$0xff]  ;;  %v268_v12 = vld [vmem:[#allocation2 + $0x28] sm:$0xff]  ;;  %v266_v14 = vld [vmem:[#allocation2 + $0x18] sm:$0xff]  ;;  %s204_s22 = sshll.u32 %s334_s21, 4  ;;  %s335_s25 = smov 128   ;;  %s205_s22 = int_to_ptr.vmem [resolvable:$true] %s204_s22 }
   0xa   :  { %v46_v11 = vpack.c.bf16 %v45_v8, %v44_v7  ;;  %v267_v13 = vld [vmem:[#allocation2 + $0x20] sm:$0xff]  ;;  %v265_v15 = vld [vmem:[#allocation2 + $0x10] sm:$0xff]  ;;  %v264_v16 = vld [vmem:[#allocation2 + $0x8] sm:$0xff]  ;;  %s336_s26 = smov 8  }
   0xb   :  { %219 = vmatmul.msk.bf16.vlgmr.msra.gmra.mxu0 %vm55_vm1, %v49_v6  ;;  %100 = vmatpush.bf16.msra.mxu1 %v261_v5  ;;  %v263_v17 = vld [vmem:[#allocation2] sm:$0xff] }
   0xc   :  { %185 = vmatpush.bf16.msra.mxu2 %v269_v10  ;;  %v277_v21 = vld [vmem:[%s414_s4] ss:$0 sm:$0xff] }
   0xd   :  { %v278_v30 = vld [vmem:[%s416_s6] ss:$0 sm:$0xff] }
   0xe   :  { %228 = vmatmul.msk.bf16.vlgmr.msra.gmra.mxu1 %vm89_vm2, %v46_v11 }
  0x10   :  { %186 = vmatpush.bf16.msra.mxu2 %v268_v12 }
  0x14   :  { %187 = vmatpush.bf16.msra.mxu2 %v267_v13 }
  0x18   :  { %188 = vmatpush.bf16.msra.mxu2 %v266_v14 }
  0x1c   :  { %189 = vmatpush.bf16.msra.mxu2 %v265_v15 }
  0x20   :  { %190 = vmatpush.bf16.msra.mxu2 %v264_v16 }
  0x24   :  { %191 = vmatpush.bf16.msra.mxu2 %v263_v17 }
  0x88   :  { %v72_v18 = vpop.f32.mrf.mxu0 }
  0x8b   :  { %v102_v19 = vpop.f32.mrf.mxu1 }
  0x8c   :  { %v103_v20 = vadd.f32 %v102_v19, %v72_v18 }
  0x8e   :  { %v111_v24 = vadd.f32 %v277_v21, %v103_v20 }
  0x90   :  { %v74_v22 = vpop.f32.mrf.mxu0  ;;  %v113_v27 = vmax.f32 %v111_v24, 0.0 }
  0x93   :  { %v104_v23 = vpop.f32.mrf.mxu1 }
  0x94   :  { %v105_v25 = vadd.f32 %v104_v23, %v74_v22 }
  0x96   :  { %v112_v26 = vadd.f32 %v277_v21, %v105_v25 }
  0x98   :  { %v114_v28 = vmax.f32 %v112_v26, 0.0 }
  0x9a   :  { %v115_v29 = vpack.c.bf16 %v114_v28, %v113_v27 }
  0x9c   :  { %192 = vmatmul.bf16.vlgmr.msra.gmra.mxu2 %v115_v29 }
 0x11f   :  { %v193_v31 = vpop.f32.mrf.mxu2 }
 0x120   :  { %v194_v32 = vadd.f32 %v278_v30, %v193_v31 }
 0x122   :  { %198 = vst [vmem:[#allocation5] sm:$0xff] %v194_v32 }
 0x127   :  { %v195_v33 = vpop.f32.mrf.mxu2 }
 0x128   :  { %v196_v34 = vadd.f32 %v278_v30, %v195_v33 }
 0x12a   :  { %199 = vst [vmem:[#allocation5 + $0x8] sm:$0xff] %v196_v34 }
 0x12b   :  { %212 = dma.vmem_to_hbm [thread:$0]  %s205_s22, 256, %s207_s24, [#allocation4], %s335_s25, %s335_s25, %s336_s26  }
 0x12c   :  { %329 = dma.done.wait [#allocation4], 256  }
 0x12d   :  { %330 = vsyncadd [#allocation4], 4294967040 }
 0x12e   :  { %217 = vsyncpa [#allocation3], 1 }
 0x12f   :  { %218 = vsyncpa [#allocation4], 1 }

// kernel: _mlp_pallas.1
= control target key start
LH: loop header
LB: loop body
LE: loop exit
PB: predicated region body
PF: predicated region fallthrough
CT: control target
= control target key end

     0   :  { %12 = vsyncpa [#allocation3], 0  ;;  %s410_s0 = inlined_call_operand.vmem [shape: f32[16,32], index: 0, kind: input, shape index: {}]   ;;  %s411_s1 = inlined_call_operand.vmem [shape: f32[16,8], index: 1, kind: input, shape index: {}]   ;;  %s412_s2 = inlined_call_operand.vmem [shape: bf16[32,128], index: 2, kind: input, shape index: {}]   ;;  %s413_s3 = inlined_call_operand.vmem [shape: bf16[8,128], index: 3, kind: input, shape index: {}]   ;;  %s414_s4 = inlined_call_operand.vmem [shape: f32[1,128], index: 4, kind: input, shape index: {}]   ;;  %s415_s5 = inlined_call_operand.hbm [shape: bf16[128,128], index: 5, kind: input, shape index: {}]   ;;  %s416_s6 = inlined_call_operand.vmem [shape: f32[1,128], index: 6, kind: input, shape index: {}]   ;;  %s417_s7 = inlined_call_operand.hbm [shape: f32[16,128], index: 7, kind: output, shape index: {}]  }
   0x1   :  { %13 = vsyncpa [#allocation4], 0  ;;  %s28_s26 = sshll.u32 %s415_s5, 4  ;;  %s331_s27 = smov [#allocation2]   ;;  %s29_s26 = int_to_ptr.hbm [resolvable:$true] %s28_s26 }
   0x2   :  { %s30_s28 = sshll.u32 %s331_s27, 4  ;;  %s332_s29 = smov 64   ;;  %s31_s28 = int_to_ptr.vmem [resolvable:$true] %s30_s28 }
   0x3   :  { %s333_s30 = smov 4  }
   0x4   :  { %36 = dma.hbm_to_vmem [thread:$0]  %s29_s26, 1024, %s31_s28, [#allocation3], %s332_s29, %s332_s29, %s333_s30  }
   0x5   :  { %327 = dma.done.wait [#allocation3], 1024  }
   0x6   :  { %328 = vsyncadd [#allocation3], 4294966272  ;;  %vm59_vm0 = vcmask 1043456   ;;  %v54_v0 = vld [vmem:[%s413_s3] sm:$0xf]  ;;  %v262_v1 = vld [vmem:[%s412_s2 + $0x8] sm:$0xff] }
   0x7   :  { %v47_v2 = vld [vmem:[%s411_s1] sm:$0xff]  ;;  %v61_v3 = vsel %vm59_vm0, %v54_v0, 0  ;;  %v48_v4 = vld [vmem:[%s411_s1 + $0x8] sm:$0xff]  ;;  %99 = vmatpush.bf16.msra.mxu1 %v262_v1  ;;  %vm55_vm1 = vcmask 64512   ;;  %v270_v9 = vld [vmem:[#allocation2 + $0x38] sm:$0xff]  ;;  %vm89_vm2 = vcmask 261120  }
   0x8   :  { %v261_v5 = vld [vmem:[%s412_s2] sm:$0xff]  ;;  %70 = vmatpush.bf16.msra.mxu0 %v61_v3  ;;  %v49_v6 = vpack.c.bf16 %v48_v4, %v47_v2  ;;  %v45_v8 = vld [vmem:[%s410_s0 + $0x8] sm:$0xff]  ;;  %184 = vmatpush.bf16.msra.mxu2 %v270_v9  ;;  %v269_v10 = vld [vmem:[#allocation2 + $0x30] sm:$0xff]  ;;  %s334_s21 = smov [#allocation5]   ;;  %s206_s24 = sshll.u32 %s417_s7, 4  ;;  %s207_s24 = int_to_ptr.hbm [resolvable:$true] %s206_s24 }
   0x9   :  { %v44_v7 = vld [vmem:[%s410_s0] sm:$0xff]  ;;  %v268_v12 = vld [vmem:[#allocation2 + $0x28] sm:$0xff]  ;;  %v266_v14 = vld [vmem:[#allocation2 + $0x18] sm:$0xff]  ;;  %s204_s22 = sshll.u32 %s334_s21, 4  ;;  %s335_s25 = smov 128   ;;  %s205_s22 = int_to_ptr.vmem [resolvable:$true] %s204_s22 }
   0xa   :  { %v46_v11 = vpack.c.bf16 %v45_v8, %v44_v7  ;;  %v267_v13 = vld [vmem:[#allocation2 + $0x20] sm:$0xff]  ;;  %v265_v15 = vld [vmem:[#allocation2 + $0x10] sm:$0xff]  ;;  %v264_v16 = vld [vmem:[#allocation2 + $0x8] sm:$0xff]  ;;  %s336_s26 = smov 8  }
   0xb   :  { %219 = vmatmul.msk.bf16.vlgmr.msra.gmra.mxu0 %vm55_vm1, %v49_v6  ;;  %100 = vmatpush.bf16.msra.mxu1 %v261_v5  ;;  %v263_v17 = vld [vmem:[#allocation2] sm:$0xff] }
   0xc   :  { %185 = vmatpush.bf16.msra.mxu2 %v269_v10  ;;  %v277_v21 = vld [vmem:[%s414_s4] ss:$0 sm:$0xff] }
   0xd   :  { %v278_v30 = vld [vmem:[%s416_s6] ss:$0 sm:$0xff] }
   0xe   :  { %228 = vmatmul.msk.bf16.vlgmr.msra.gmra.mxu1 %vm89_vm2, %v46_v11 }
  0x10   :  { %186 = vmatpush.bf16.msra.mxu2 %v268_v12 }
  0x14   :  { %187 = vmatpush.bf16.msra.mxu2 %v267_v13 }
  0x18   :  { %188 = vmatpush.bf16.msra.mxu2 %v266_v14 }
  0x1c   :  { %189 = vmatpush.bf16.msra.mxu2 %v265_v15 }
  0x20   :  { %190 = vmatpush.bf16.msra.mxu2 %v264_v16 }
  0x24   :  { %191 = vmatpush.bf16.msra.mxu2 %v263_v17 }
  0x88   :  { %v72_v18 = vpop.f32.mrf.mxu0 }
  0x8b   :  { %v102_v19 = vpop.f32.mrf.mxu1 }
  0x8c   :  { %v103_v20 = vadd.f32 %v102_v19, %v72_v18 }
  0x8e   :  { %v111_v24 = vadd.f32 %v277_v21, %v103_v20 }
  0x90   :  { %v74_v22 = vpop.f32.mrf.mxu0  ;;  %v113_v27 = vmax.f32 %v111_v24, 0.0 }
  0x93   :  { %v104_v23 = vpop.f32.mrf.mxu1 }
  0x94   :  { %v105_v25 = vadd.f32 %v104_v23, %v74_v22 }
  0x96   :  { %v112_v26 = vadd.f32 %v277_v21, %v105_v25 }
  0x98   :  { %v114_v28 = vmax.f32 %v112_v26, 0.0 }
  0x9a   :  { %v115_v29 = vpack.c.bf16 %v114_v28, %v113_v27 }
  0x9c   :  { %192 = vmatmul.bf16.vlgmr.msra.gmra.mxu2 %v115_v29 }
 0x11f   :  { %v193_v31 = vpop.f32.mrf.mxu2 }
 0x120   :  { %v194_v32 = vadd.f32 %v278_v30, %v193_v31 }
 0x122   :  { %198 = vst [vmem:[#allocation5] sm:$0xff] %v194_v32 }
 0x127   :  { %v195_v33 = vpop.f32.mrf.mxu2 }
 0x128   :  { %v196_v34 = vadd.f32 %v278_v30, %v195_v33 }
 0x12a   :  { %199 = vst [vmem:[#allocation5 + $0x8] sm:$0xff] %v196_v34 }
 0x12b   :  { %212 = dma.vmem_to_hbm [thread:$0]  %s205_s22, 256, %s207_s24, [#allocation4], %s335_s25, %s335_s25, %s336_s26  }
 0x12c   :  { %329 = dma.done.wait [#allocation4], 256  }
 0x12d   :  { %330 = vsyncadd [#allocation4], 4294967040 }
 0x12e   :  { %217 = vsyncpa [#allocation3], 1 }
 0x12f   :  { %218 = vsyncpa [#allocation4], 1 }

</bundles_post_ra>
